<compile_context>
chip_gen: v6e
topology: v6e:2x2x1
jax: 0.10.0
libtpu: 0.0.40
codegen_flags: <defaults>
</compile_context>

<pallas_src>
import jax
import jax.numpy as jnp
from jax.experimental import pallas as pl
from jax.experimental.pallas import tpu as pltpu

LANES = 128
SUBLANES = 8
ROW_BLOCK = 2048   # 2048 rows x 128 lanes x 4 B = 1 MiB per f32 tile


def _copy_kernel(x_ref, o_ref):
    o_ref[...] = x_ref[...]


@jax.jit
def _identity_copy(x):
    """Run the Pallas copy kernel on x (any shape) and return its values."""
    orig_shape = x.shape
    flat = x.reshape(-1)
    n = flat.shape[0]

    # View as a lane-dense (rows, 128) slab, rows rounded up to a sublane group.
    rows = pl.cdiv(n, LANES)
    rows = ((rows + SUBLANES - 1) // SUBLANES) * SUBLANES
    if rows <= ROW_BLOCK:
        block_rows = rows
    else:
        block_rows = ROW_BLOCK
        rows = ((rows + ROW_BLOCK - 1) // ROW_BLOCK) * ROW_BLOCK
    n_pad = rows * LANES

    if n_pad != n:
        flat = jnp.zeros((n_pad,), x.dtype).at[:n].set(flat)
    arr = flat.reshape(rows, LANES)

    grid = (rows // block_rows,)
    out = pl.pallas_call(
        _copy_kernel,
        out_shape=jax.ShapeDtypeStruct((rows, LANES), x.dtype),
        grid_spec=pltpu.PrefetchScalarGridSpec(
            num_scalar_prefetch=0,
            grid=grid,
            in_specs=[pl.BlockSpec((block_rows, LANES), lambda i: (i, 0))],
            out_specs=pl.BlockSpec((block_rows, LANES), lambda i: (i, 0)),
        ),
        compiler_params=pltpu.CompilerParams(
            dimension_semantics=("parallel",),
        ),
    )(arr)

    return out.reshape(-1)[:n].reshape(orig_shape)


def print_forward(x):
    """Pallas equivalent of Print.forward: print(x.shape); return x."""
    # TODO(synk): print(x.shape) is a host-side Python effect with no in-kernel
    # equivalent; the shape is static, so it is printed here in the wrapper.
    print(tuple(x.shape))
    return _identity_copy(x)


if __name__ == "__main__":
    key = jax.random.PRNGKey(0)
    B, C, H, W = 2, 4, 16, 16
    x = jax.random.normal(key, (B, C, H, W), jnp.float32)

    y = print_forward(x)
    y = jax.block_until_ready(y)

    assert y.shape == x.shape
    assert y.dtype == x.dtype
    assert jnp.array_equal(y, x)

    print("KERNEL_OK")
</pallas_src>

<mosaic_0001>
module attributes {stable_mosaic.version = 11 : i64} {
  func.func @_copy_kernel(%arg0: i32, %arg1: memref<16x128xf32, #tpu.memory_space<vmem>>, %arg2: memref<16x128xf32, #tpu.memory_space<vmem>>) attributes {dimension_semantics = [#tpu.dimension_semantics<parallel>], iteration_bounds = array<i64: 1>, scalar_prefetch = 0 : i64, scratch_operands = 0 : i64, tpu.core_type = #tpu.core_type<tc>, window_params = [{transform_indices = @transform_0, window_bounds = array<i64: 16, 128>}, {transform_indices = @transform_1, window_bounds = array<i64: 16, 128>}]} {
    %c0 = arith.constant 0 : index
    %c0_0 = arith.constant 0 : index
    %0 = vector.load %arg1[%c0, %c0_0] : memref<16x128xf32, #tpu.memory_space<vmem>>, vector<16x128xf32>
    %c0_1 = arith.constant 0 : index
    %c0_2 = arith.constant 0 : index
    %1 = vector.load %arg2[%c0_1, %c0_2] : memref<16x128xf32, #tpu.memory_space<vmem>>, vector<16x128xf32>
    tpu.vector_store %arg2[%c0_1, %c0_2], %0 {strides = array<i32>} : memref<16x128xf32, #tpu.memory_space<vmem>>, vector<16x128xf32>,
    return
  }
  func.func @transform_0(%arg0: i32) -> (i32, i32) {
    %c0_i32 = arith.constant 0 : i32
    %c0_i32_0 = arith.constant 0 : i32
    return %arg0, %c0_i32 : i32, i32
  }
  func.func @transform_1(%arg0: i32) -> (i32, i32) {
    %c0_i32 = arith.constant 0 : i32
    %c0_i32_0 = arith.constant 0 : i32
    return %arg0, %c0_i32 : i32, i32
  }
}

</mosaic_0001>

<bundles_post_ra>
// kernel: _identity_copy.1
= control target key start
LH: loop header
LB: loop body
LE: loop exit
PB: predicated region body
PF: predicated region fallthrough
CT: control target
= control target key end

     0   :  { %s38_s0 = inlined_call_operand.vmem [shape: f32[16,128], index: 0, kind: input, shape index: {}]   ;;  %s39_s1 = inlined_call_operand.vmem [shape: f32[16,128], index: 1, kind: output, shape index: {}]  }
   0x1   :  { %v8_v0 = vld [vmem:[%s38_s0] sm:$0xff]  ;;  %v9_v1 = vld [vmem:[%s38_s0 + $0x8] sm:$0xff] }
   0x2   :  { %10 = vst [vmem:[%s39_s1] sm:$0xff] %v8_v0  ;;  %11 = vst [vmem:[%s39_s1 + $0x8] sm:$0xff] %v9_v1 }

</bundles_post_ra>
